<compile_context>
chip_gen: v6e
topology: v6e:2x2x1
jax: 0.10.0
libtpu: 0.0.40
codegen_flags: <defaults>
</compile_context>

<pallas_src>
import jax
import jax.numpy as jnp
from jax.experimental import pallas as pl
from jax.experimental.pallas import tpu as pltpu


def _mlp_kernel(xt_ref, w_ref, o_ref):
    # xt_ref: (4, B)  -- features on sublanes, batch on lanes
    # w_ref : (4, 1)  -- fused weight column (w2 @ w1).T
    # o_ref : (1, B)  -- lane-dense output row
    prod = xt_ref[...] * w_ref[...]                        # VPU broadcast-multiply
    o_ref[...] = jnp.sum(prod, axis=0, keepdims=True).astype(o_ref.dtype)  # XLU sublane reduce


def multilayer_forward(x, w1, w2):
    """x: (B, 4) f32, w1: (2, 4), w2: (1, 2)  ->  (B, 1) f32 (== (x @ w1.T) @ w2.T)."""
    B = x.shape[0]

    # Algebraic fusion of the two bias-free linear layers (done in the wrapper,
    # where XLA handles these tiny constant-like ops for free).
    w_eff = jnp.dot(w2, w1)        # (1, 4)
    w_col = w_eff.T                # (4, 1): contraction axis on sublanes
    x_t = x.T                      # (4, B): batch on lanes

    y_row = pl.pallas_call(
        _mlp_kernel,
        out_shape=jax.ShapeDtypeStruct((1, B), x.dtype),
        in_specs=[
            pl.BlockSpec(memory_space=pltpu.MemorySpace.VMEM),  # whole (4, B) tile resident
            pl.BlockSpec(memory_space=pltpu.MemorySpace.VMEM),  # whole (4, 1) weight resident
        ],
        out_specs=pl.BlockSpec(memory_space=pltpu.MemorySpace.VMEM),
    )(x_t, w_col)

    return y_row.T                 # (B, 1), matching nn.Linear output layout


if __name__ == "__main__":
    key = jax.random.PRNGKey(0)
    kx, k1, k2 = jax.random.split(key, 3)

    batch = 8
    # Deterministic "PyTorch-like" init: uniform(-1/sqrt(in), 1/sqrt(in)).
    x = jax.random.normal(kx, (batch, 4), dtype=jnp.float32)
    w1 = jax.random.uniform(k1, (2, 4), dtype=jnp.float32, minval=-0.5, maxval=0.5)
    w2 = jax.random.uniform(k2, (1, 2), dtype=jnp.float32,
                            minval=-1.0 / jnp.sqrt(2.0), maxval=1.0 / jnp.sqrt(2.0))

    out = jax.jit(multilayer_forward)(x, w1, w2)
    jax.block_until_ready(out)

    # Cross-check against the un-fused two-matmul reference.
    ref = (x @ w1.T) @ w2.T
    assert out.shape == (batch, 1)
    assert jnp.allclose(out, ref, atol=1e-5, rtol=1e-5)

    print("KERNEL_OK")
</pallas_src>

<mosaic_0001>
module attributes {stable_mosaic.version = 11 : i64} {
  func.func @_mlp_kernel(%arg0: memref<4x8xf32, #tpu.memory_space<vmem>>, %arg1: memref<4x1xf32, #tpu.memory_space<vmem>>, %arg2: memref<1x8xf32, #tpu.memory_space<vmem>>) attributes {dimension_semantics = [], scalar_prefetch = 0 : i64, scratch_operands = 0 : i64, tpu.core_type = #tpu.core_type<tc>} {
    %c0 = arith.constant 0 : index
    %c0_0 = arith.constant 0 : index
    %0 = vector.load %arg0[%c0, %c0_0] : memref<4x8xf32, #tpu.memory_space<vmem>>, vector<4x8xf32>
    %c0_1 = arith.constant 0 : index
    %c0_2 = arith.constant 0 : index
    %1 = vector.load %arg1[%c0_1, %c0_2] : memref<4x1xf32, #tpu.memory_space<vmem>>, vector<4x1xf32>
    %2 = vector.broadcast %1 : vector<4x1xf32> to vector<4x8xf32>
    %3 = arith.mulf %0, %2 : vector<4x8xf32>
    %cst = arith.constant dense<0.000000e+00> : vector<8xf32>
    %4 = vector.multi_reduction <add>, %3, %cst [0] : vector<4x8xf32> to vector<8xf32>
    %5 = vector.shape_cast %4 : vector<8xf32> to vector<1x8xf32>
    %c0_3 = arith.constant 0 : index
    %c0_4 = arith.constant 0 : index
    %6 = vector.load %arg2[%c0_3, %c0_4] : memref<1x8xf32, #tpu.memory_space<vmem>>, vector<1x8xf32>
    tpu.vector_store %arg2[%c0_3, %c0_4], %5 {strides = array<i32>} : memref<1x8xf32, #tpu.memory_space<vmem>>, vector<1x8xf32>,
    return
  }
}

</mosaic_0001>

<bundles_post_ra>
// kernel: multilayer_forward.1
= control target key start
LH: loop header
LB: loop body
LE: loop exit
PB: predicated region body
PF: predicated region fallthrough
CT: control target
= control target key end

     0   :  { %v69_v1 = vmov 0   ;;  %s95_s0 = inlined_call_operand.vmem [shape: f32[4,8], index: 0, kind: input, shape index: {}]   ;;  %s96_s1 = inlined_call_operand.vmem [shape: f32[4,1], index: 1, kind: input, shape index: {}]   ;;  %s97_s2 = inlined_call_operand.hbm [shape: f32[1,8], index: 2, kind: output, shape index: {}]  }
   0x1   :  { %v13_v0 = vld [vmem:[%s96_s1] sm:$0xf]  ;;  %46 = vset.pattern.permute.xlu0 %v69_v1 }
   0x2   :  { %7 = vsyncpa [#allocation3], 0  ;;  %16 = vperm.xlu0 %46, %v13_v0   ;;  %v12_v2 = vld [vmem:[%s95_s0] sm:$0xf]  ;;  %vm20_vm0 = vcmask 60416   ;;  %s70_s13 = smov [#allocation2]  }
   0x3   :  { %s36_s14 = sshll.u32 %s70_s13, 4  ;;  %vm28_vm1 = vcmask 57344   ;;  %s37_s14 = int_to_ptr.vmem [resolvable:$true] %s36_s14 }
   0x4   :  { %s47_s1 = scalar_lea.vmem %s37_s14, 16  ;;  %s51_s15 = scalar_lea.vmem %s37_s14, 32 }
   0x5   :  { %p48_p0 = scmp.ne.s32.totalorder %s37_s14, %s47_s1  ;;  %p52_p1 = scmp.lt.s32.totalorder %s37_s14, %s37_s14 }
   0x6   :  { %p53_p2 = scmp.lt.s32.totalorder %s51_s15, %s47_s1 }
   0x8   :  { %p54_p3 = por %p53_p2, %p52_p1 }
   0xa   :  { %p55_p4 = pnand %p54_p3, %p48_p0 }
  0x7d   :  { %v17_v3 = vpop.permute.xlu0 %16 }
  0x7e   :  { %v19_v4 = vmul.f32 %v17_v3, %v12_v2 }
  0x80   :  { %v21_v5 = vsel %vm20_vm0, %v19_v4, 0.0 }
  0x81   :  { %v22_v6 = vrot.slane %v21_v5, 4 }
  0x83   :  { %v23_v7 = vadd.f32 %v22_v6, %v21_v5 }
  0x85   :  { %v24_v8 = vrot.slane %v23_v7, 2 }
  0x87   :  { %v25_v9 = vadd.f32 %v24_v8, %v23_v7 }
  0x89   :  { %v26_v10 = vrot.slane %v25_v9, 1 }
  0x8b   :  { %v27_v11 = vadd.f32 %v26_v10, %v25_v9 }
  0x8d   :  { %29 = vst.msk [vmem:[#allocation2] sm:$0x1] %vm28_vm1, %v27_v11 }
  0x8e   :  { %58 = shalt.err (!%p55_p4)
}
  0x8f   :  { %39 = dma.vmem_to_hbm [thread:$0]  %s37_s14, 16, %s97_s2, [#allocation3]  }
  0x90   :  { %67 = dma.done.wait [#allocation3], 16  }
  0x91   :  { %68 = vsyncadd [#allocation3], 4294967280 }
  0x92   :  { %43 = vsyncpa [#allocation3], 1 }

</bundles_post_ra>
